<compile_context>
chip_gen: v7x
topology: tpu7x:2x2x1
jax: 0.10.0
libtpu: 0.0.40
codegen_flags: <defaults>
</compile_context>

<pallas_src>
import functools

import jax
import jax.numpy as jnp
from jax.experimental import pallas as pl
from jax.experimental.pallas import tpu as pltpu

_SUBLANE = 8     # f32 sublane count


def _round_up(x, m):
    return (x + m - 1) // m * m


def _dqn_blinds_kernel(x_ref, wf_ref, bf_ref, stpt_ref, blind_ref, *, n_stpt):
    x = x_ref[...].astype(jnp.float32)                      # x.float()
    # Entire collapsed chain: one MXU push per batch tile.
    y = jnp.dot(x, wf_ref[...], preferred_element_type=jnp.float32) + bf_ref[...]
    stpt_ref[...] = y[:, :n_stpt]
    blind_ref[...] = y[:, n_stpt:]


def collapse_params(params):
    """One-time parameter prep: fold the activation-free 4-linear chain into a
    single (d_in, n_stpt+n_blind) weight and (1, n_stpt+n_blind) bias."""
    w1, b1, w4, b4, ws, bs, wb, bb = params
    wh = jnp.concatenate([ws, wb], axis=1)                  # (hid, n_heads)
    bh = jnp.concatenate([bs, bb], axis=1)                  # (1, n_heads)
    wf = (w1 @ w4) @ wh                                      # (d_in, n_heads)
    bf = (b1 @ w4 + b4) @ wh + bh                            # (1, n_heads)
    return ((wf.astype(jnp.float32), bf.astype(jnp.float32)),
            (int(ws.shape[1]), int(wb.shape[1])))


def _choose_batch_tile(B, batch_tile):
    """Batch tile: multiple of 8.  Small B -> one grid step; otherwise aim for
    >= 2 grid steps (v7x megacore) capped at batch_tile (per-step overhead
    ~0.35us amortizes well by ~1024 rows)."""
    B8 = _round_up(B, _SUBLANE)
    if B8 <= 2 * _SUBLANE:
        return B8
    half = _round_up(pl.cdiv(B8, 2), _SUBLANE)
    return min(_round_up(batch_tile, _SUBLANE), half)


@functools.partial(jax.jit, static_argnames=("n_stpt", "n_blind", "batch_tile"))
def deepq_blinds_forward(x, collapsed_params, *, n_stpt, n_blind, batch_tile=1024):
    """Fused forward: batch is gridded so x streaming double-buffers behind the
    single matmul; the collapsed weight/bias stay VMEM-resident; the two heads
    are written at their real widths (no padded writeback, no post-slices)."""
    wf, bf = collapsed_params
    B = x.shape[0]
    d_in = wf.shape[0]
    n_heads = wf.shape[1]
    assert n_heads == n_stpt + n_blind

    bm = _choose_batch_tile(B, batch_tile)
    grid = (pl.cdiv(B, bm),)                 # ragged last block masked by Pallas

    def resident(a):
        # Same block every grid step -> fetched once, lives in VMEM.
        return pl.BlockSpec(a.shape, lambda i: (0,) * a.ndim)

    flops = 2 * B * d_in * n_heads
    bytes_accessed = 4 * (B * d_in + d_in * n_heads + n_heads + B * n_heads)

    kernel = functools.partial(_dqn_blinds_kernel, n_stpt=n_stpt)

    stpt, blind = pl.pallas_call(
        kernel,
        out_shape=(jax.ShapeDtypeStruct((B, n_stpt), jnp.float32),
                   jax.ShapeDtypeStruct((B, n_blind), jnp.float32)),
        grid=grid,
        in_specs=[
            pl.BlockSpec((bm, d_in), lambda i: (i, 0)),     # streamed batch tiles
            resident(wf),
            resident(bf),
        ],
        out_specs=(pl.BlockSpec((bm, n_stpt), lambda i: (i, 0)),
                   pl.BlockSpec((bm, n_blind), lambda i: (i, 0))),
        compiler_params=pltpu.CompilerParams(
            dimension_semantics=("parallel",),   # megacore sharding on v7x
            vmem_limit_bytes=32 * 1024 * 1024,   # safe on v5e/v6e/v7x; tiles are ~MiBs
        ),
        cost_estimate=pl.CostEstimate(
            flops=flops, transcendentals=0, bytes_accessed=bytes_accessed),
    )(x, wf, bf)
    return stpt, blind


def init_params(key, input_dim, hidden_dim, n_stpt_actions, n_blind_actions):
    """Deterministic init matching PyTorch nn.Linear default:
    U(-1/sqrt(fan_in), 1/sqrt(fan_in)) for weight and bias.
    Weights stored transposed: (in_features, out_features)."""
    def linear(key, fan_in, fan_out):
        kw, kb = jax.random.split(key)
        bound = 1.0 / jnp.sqrt(jnp.float32(fan_in))
        w = jax.random.uniform(kw, (fan_in, fan_out), jnp.float32, -bound, bound)
        b = jax.random.uniform(kb, (1, fan_out), jnp.float32, -bound, bound)
        return w, b

    k1, k4, ks, kb = jax.random.split(key, 4)
    w1, b1 = linear(k1, input_dim, hidden_dim)
    w4, b4 = linear(k4, hidden_dim, hidden_dim)
    ws, bs = linear(ks, hidden_dim, n_stpt_actions)
    wb, bb = linear(kb, hidden_dim, n_blind_actions)
    return (w1, b1, w4, b4, ws, bs, wb, bb)


def reference_forward(x, params):
    w1, b1, w4, b4, ws, bs, wb, bb = params
    h1 = x.astype(jnp.float32) @ w1 + b1
    h2 = h1 @ w4 + b4
    return h2 @ ws + bs, h2 @ wb + bb


if __name__ == "__main__":
    # TODO(synk): RMSprop optimizer, MSELoss and checkpoint save/load are
    # training / host-side concerns of the PyTorch module, not part of forward.

    # Small shapes consistent with the module's constructor:
    # input_dims=[16], hidden_dim=32, n_stpt_actions=4, n_blind_actions=3, batch=8
    B, D_IN, HID, N_STPT, N_BLIND = 8, 16, 32, 4, 3

    key = jax.random.PRNGKey(0)
    kx, kp = jax.random.split(key)
    x = jax.random.normal(kx, (B, D_IN), jnp.float32)
    params = init_params(kp, D_IN, HID, N_STPT, N_BLIND)
    collapsed, (n_stpt, n_blind) = collapse_params(params)

    # Small-batch run (single grid step).
    stpt, blind = deepq_blinds_forward(x, collapsed, n_stpt=n_stpt, n_blind=n_blind)
    jax.block_until_ready((stpt, blind))

    stpt_ref, blind_ref = reference_forward(x, params)
    assert stpt.shape == (B, N_STPT) and blind.shape == (B, N_BLIND)
    assert jnp.allclose(stpt, stpt_ref, atol=1e-5, rtol=1e-5)
    assert jnp.allclose(blind, blind_ref, atol=1e-5, rtol=1e-5)

    # Larger, non-tile-multiple batch: exercises the >=2-step parallel grid
    # (both v7x TensorCores) and the masked ragged last block (no jnp.pad).
    B2 = 1000
    x2 = jax.random.normal(jax.random.PRNGKey(1), (B2, D_IN), jnp.float32)
    stpt2, blind2 = deepq_blinds_forward(x2, collapsed, n_stpt=n_stpt, n_blind=n_blind)
    jax.block_until_ready((stpt2, blind2))
    stpt2_ref, blind2_ref = reference_forward(x2, params)
    assert stpt2.shape == (B2, N_STPT) and blind2.shape == (B2, N_BLIND)
    assert jnp.allclose(stpt2, stpt2_ref, atol=1e-4, rtol=1e-4)
    assert jnp.allclose(blind2, blind2_ref, atol=1e-4, rtol=1e-4)

    print("KERNEL_OK")
</pallas_src>

<mosaic_0001>
module attributes {stable_mosaic.version = 11 : i64} {
  func.func @_dqn_blinds_kernel(%arg0: i32, %arg1: memref<8x16xf32, #tpu.memory_space<vmem>>, %arg2: memref<16x7xf32, #tpu.memory_space<vmem>>, %arg3: memref<1x7xf32, #tpu.memory_space<vmem>>, %arg4: memref<8x4xf32, #tpu.memory_space<vmem>>, %arg5: memref<8x3xf32, #tpu.memory_space<vmem>>) attributes {dimension_semantics = [#tpu.dimension_semantics<parallel>], iteration_bounds = array<i64: 1>, scalar_prefetch = 0 : i64, scratch_operands = 0 : i64, tpu.core_type = #tpu.core_type<tc>, window_params = [{transform_indices = @transform_0, window_bounds = array<i64: 8, 16>}, {pipeline_mode = #tpu.pipeline_mode<synchronous>, transform_indices = @transform_1, window_bounds = array<i64: 16, 7>}, {pipeline_mode = #tpu.pipeline_mode<synchronous>, transform_indices = @transform_2, window_bounds = array<i64: 1, 7>}, {transform_indices = @transform_3, window_bounds = array<i64: 8, 4>}, {transform_indices = @transform_4, window_bounds = array<i64: 8, 3>}]} {
    %c0 = arith.constant 0 : index
    %c0_0 = arith.constant 0 : index
    %0 = vector.load %arg1[%c0, %c0_0] : memref<8x16xf32, #tpu.memory_space<vmem>>, vector<8x16xf32>
    %c0_1 = arith.constant 0 : index
    %c0_2 = arith.constant 0 : index
    %1 = vector.load %arg2[%c0_1, %c0_2] : memref<16x7xf32, #tpu.memory_space<vmem>>, vector<16x7xf32>
    %cst = arith.constant dense<0.000000e+00> : vector<8x7xf32>
    %2 = tpu.matmul %0, %1, %cst {dimension_numbers = #tpu.dot_dimension_numbers<[1], [0], [0], [1], [0, 0, 1, 1], [], []>} : vector<8x16xf32>, vector<16x7xf32>, vector<8x7xf32> -> vector<8x7xf32>
    %c0_3 = arith.constant 0 : index
    %c0_4 = arith.constant 0 : index
    %3 = vector.load %arg3[%c0_3, %c0_4] : memref<1x7xf32, #tpu.memory_space<vmem>>, vector<1x7xf32>
    %4 = vector.broadcast %3 : vector<1x7xf32> to vector<8x7xf32>
    %5 = arith.addf %2, %4 : vector<8x7xf32>
    %6 = vector.extract_strided_slice %5 {offsets = [0, 0], sizes = [8, 4], strides = [1, 1]} : vector<8x7xf32> to vector<8x4xf32>
    %c0_5 = arith.constant 0 : index
    %c0_6 = arith.constant 0 : index
    %7 = vector.load %arg4[%c0_5, %c0_6] : memref<8x4xf32, #tpu.memory_space<vmem>>, vector<8x4xf32>
    tpu.vector_store %arg4[%c0_5, %c0_6], %6 {strides = array<i32>} : memref<8x4xf32, #tpu.memory_space<vmem>>, vector<8x4xf32>,
    %8 = vector.extract_strided_slice %5 {offsets = [0, 4], sizes = [8, 3], strides = [1, 1]} : vector<8x7xf32> to vector<8x3xf32>
    %c0_7 = arith.constant 0 : index
    %c0_8 = arith.constant 0 : index
    %9 = vector.load %arg5[%c0_7, %c0_8] : memref<8x3xf32, #tpu.memory_space<vmem>>, vector<8x3xf32>
    tpu.vector_store %arg5[%c0_7, %c0_8], %8 {strides = array<i32>} : memref<8x3xf32, #tpu.memory_space<vmem>>, vector<8x3xf32>,
    return
  }
  func.func @transform_0(%arg0: i32) -> (i32, i32) {
    %c0_i32 = arith.constant 0 : i32
    %c0_i32_0 = arith.constant 0 : i32
    return %arg0, %c0_i32 : i32, i32
  }
  func.func @transform_1(%arg0: i32) -> (i32, i32) {
    %c0_i32 = arith.constant 0 : i32
    %c0_i32_0 = arith.constant 0 : i32
    %c0_i32_1 = arith.constant 0 : i32
    return %c0_i32, %c0_i32_0 : i32, i32
  }
  func.func @transform_2(%arg0: i32) -> (i32, i32) {
    %c0_i32 = arith.constant 0 : i32
    %c0_i32_0 = arith.constant 0 : i32
    %c0_i32_1 = arith.constant 0 : i32
    return %c0_i32, %c0_i32_0 : i32, i32
  }
  func.func @transform_3(%arg0: i32) -> (i32, i32) {
    %c0_i32 = arith.constant 0 : i32
    %c0_i32_0 = arith.constant 0 : i32
    return %arg0, %c0_i32 : i32, i32
  }
  func.func @transform_4(%arg0: i32) -> (i32, i32) {
    %c0_i32 = arith.constant 0 : i32
    %c0_i32_0 = arith.constant 0 : i32
    return %arg0, %c0_i32 : i32, i32
  }
}

</mosaic_0001>

<bundles_post_ra>
// kernel: deepq_blinds_forward.1
= control target key start
LH: loop header
LB: loop body
LE: loop exit
PB: predicated region body
PF: predicated region fallthrough
CT: control target
= control target key end

     0   :  { %v135_v0 = vmov 0.0|0.0   ;;  %vm136_vm0 = vmmov 0   ;;  %v137_v3 = vmov 0.0   ;;  %vm26_vm1 = vcmask 130048   ;;  %s138_s24 = smov 124   ;;  %s182_s1 = inlined_call_operand.vmem [shape: f32[16,7], index: 1, kind: input, shape index: {}]   ;;  %s183_s0 = inlined_call_operand.vmem [shape: f32[8,16], index: 0, kind: input, shape index: {}]   ;;  %s184_s2 = inlined_call_operand.vmem [shape: f32[1,7], index: 2, kind: input, shape index: {}]   ;;  %s185_s3 = inlined_call_operand.vmem [shape: f32[8,4], index: 3, kind: output, shape index: {0}]   ;;  %s186_s4 = inlined_call_operand.vmem [shape: f32[8,3], index: 4, kind: output, shape index: {1}]  }
   0x1   :  { %128 = vmatprep.subr.bf16.mxu0 %v135_v0  ;;  %v17_v1 = vld [vmem:[%s182_s1] sm:$0xff]  ;;  %v18_v2 = vld [vmem:[%s182_s1 + $0x8] sm:$0xff]  ;;  %125 = vmatprep.mubr.msk.f32.mxu0 %vm136_vm0, %v137_v3  ;;  %vm100_vm2 = vcmask 31744   ;;  %vm106_vm3 = vcmask 23552  }
   0x2   :  { %v129_v4 = vpack.c.bf16 %v18_v2, %v17_v1  ;;  %v16_v5 = vld [vmem:[%s183_s0] sm:$0xff] }
   0x3   :  { %v116_v6 = vld [vmem:[%s184_s2] ss:$0 sm:$0xff] }
   0x4   :  { %130 = vmatpush3.bf16.msra.mxu0 %v129_v4 }
   0x7   :  { %126 = vmatmul.mubr.msk.f32.vlgmr.msra.gmra.mrb[0].mxu0 %vm26_vm1, %v16_v5 }
  0xda   :  { %v96_v7 = vpop.f32.mrb[0].mxu0 }
  0xdb   :  { %v97_v8 = vadd.f32 %v116_v6, %v96_v7  ;;  %v127_v9 = vpop.f32.mrb[1].mxu0 }
  0xdd   :  { %101 = vst.msk [vmem:[%s185_s3] sm:$0xff] %vm100_vm2, %v97_v8  ;;  %103 = vrot.lane.b32.xlu0 %v97_v8, %s138_s24 }
 0x14f   :  { %v104_v10 = vpop.permute.xlu0 %103 }
 0x150   :  { %107 = vst.msk [vmem:[%s186_s4] sm:$0xff] %vm106_vm3, %v104_v10 }

</bundles_post_ra>
